<compile_context>
chip_gen: v6e
topology: v6e:2x2x1
jax: 0.10.0
libtpu: 0.0.40
codegen_flags: <defaults>
</compile_context>

<pallas_src>
import jax
import jax.numpy as jnp
from jax.experimental import pallas as pl
from jax.experimental.pallas import tpu as pltpu


def value_net_kernel(xt_ref, w1t_ref, b1_ref, w2t_ref, b2_ref, w3_ref, b3_ref, out_ref):
    obs_dims = xt_ref.shape[0]          # static (from the block shape)
    xt = xt_ref[...]                    # (obs_dims, TILE_B), batch on lanes
    w1t = w1t_ref[...]                  # (64, obs_dims)

    # fc1 + ReLU: K = obs_dims is tiny -> unrolled VPU FMA chain, keep off MXU.
    h1 = b1_ref[...] + w1t[:, 0:1] * xt[0:1, :]            # (64, TILE_B)
    for k in range(1, obs_dims):
        h1 = h1 + w1t[:, k:k + 1] * xt[k:k + 1, :]
    h1 = jnp.maximum(h1, 0.0)

    # fc2 + ReLU: (32, 64) @ (64, TILE_B) on the MXU, lane-dense N = TILE_B.
    h2 = jnp.dot(w2t_ref[...], h1, preferred_element_type=jnp.float32)  # (32, TILE_B)
    h2 = jnp.maximum(h2 + b2_ref[...], 0.0)

    # value head (N = 1): elementwise multiply + sublane reduce (VPU/XLU, no MXU).
    v = jnp.sum(h2 * w3_ref[...], axis=0, keepdims=True) + b3_ref[...]  # (1, TILE_B)
    out_ref[...] = v.astype(out_ref.dtype)


def _round_up(n, m):
    return ((n + m - 1) // m) * m


def _resident(a):
    nd = a.ndim
    return pl.BlockSpec(a.shape, lambda i, _nd=nd: (0,) * _nd)


def value_network_forward(x, params, *, tile_b=1024):
    """x: (B, obs_dims) float32 -> (B, 1) float32."""
    w1t, b1, w2t, b2, w3, b3 = params
    B, obs_dims = x.shape

    # Lane tile: multiple of 128, capped at tile_b, no larger than needed.
    tb = max(128, min(_round_up(tile_b, 128), _round_up(B, 128)))
    B_pad = _round_up(B, tb)
    num_tiles = B_pad // tb

    # Layout plumbing: zero-pad the batch and put it on the lane axis.
    xt = jnp.pad(x, ((0, B_pad - B), (0, 0))).T            # (obs_dims, B_pad)

    out = pl.pallas_call(
        value_net_kernel,
        out_shape=jax.ShapeDtypeStruct((1, B_pad), jnp.float32),
        grid=(num_tiles,),
        in_specs=[
            pl.BlockSpec((obs_dims, tb), lambda i: (0, i)),   # x tile, streamed
            _resident(w1t), _resident(b1), _resident(w2t),
            _resident(b2), _resident(w3), _resident(b3),
        ],
        out_specs=pl.BlockSpec((1, tb), lambda i: (0, i)),    # lane-dense output
        compiler_params=pltpu.CompilerParams(
            dimension_semantics=("parallel",)),
    )(xt, w1t, b1, w2t, b2, w3, b3)

    # (1, B_pad) -> (B, 1)
    return out[0, :B][:, None]


def init_params(key, obs_space_dims):
    """PyTorch nn.Linear default init: U(-1/sqrt(fan_in), +1/sqrt(fan_in)).

    Weights are stored (out_features, in_features) -- PyTorch's native layout,
    which is exactly what the transposed-batch kernel consumes.  Biases are
    (out_features, 1) columns; the value weight is stored as a (32, 1) column.
    """
    def linear(k, in_f, out_f):
        kw, kb = jax.random.split(k)
        bound = 1.0 / (in_f ** 0.5)
        w = jax.random.uniform(kw, (out_f, in_f), jnp.float32, -bound, bound)
        b = jax.random.uniform(kb, (out_f, 1), jnp.float32, -bound, bound)
        return w, b

    k1, k2, k3 = jax.random.split(key, 3)
    w1t, b1 = linear(k1, obs_space_dims, 64)   # (64, obs), (64, 1)
    w2t, b2 = linear(k2, 64, 32)               # (32, 64), (32, 1)
    w3t, b3 = linear(k3, 32, 1)                # (1, 32),  (1, 1)
    return [w1t, b1, w2t, b2, w3t.T, b3]       # value weight as (32, 1) column


def reference_forward(x, params):
    w1t, b1, w2t, b2, w3, b3 = params
    h1 = jnp.maximum(x @ w1t.T + b1.T, 0.0)
    h2 = jnp.maximum(h1 @ w2t.T + b2.T, 0.0)
    return h2 @ w3 + b3


if __name__ == "__main__":
    key = jax.random.PRNGKey(0)
    obs_space_dims = 3   # Pendulum-v1 observation dim
    kx, kp = jax.random.split(key)
    params = init_params(kp, obs_space_dims)

    # Small batch (single padded 128-lane tile), matches typical RL usage shape.
    x_small = jax.random.normal(kx, (4, obs_space_dims), jnp.float32)
    out_small = jax.block_until_ready(value_network_forward(x_small, params))
    ref_small = reference_forward(x_small, params)
    assert out_small.shape == (4, 1)
    assert jnp.allclose(out_small, ref_small, atol=1e-5, rtol=1e-5)

    # Non-multiple batch spread over several grid steps (exercises padding +
    # the pipelined/parallel grid path).
    x_big = jax.random.normal(kx, (260, obs_space_dims), jnp.float32)
    out_big = jax.block_until_ready(value_network_forward(x_big, params, tile_b=128))
    ref_big = reference_forward(x_big, params)
    assert out_big.shape == (260, 1)
    assert jnp.allclose(out_big, ref_big, atol=1e-5, rtol=1e-5)

    print("KERNEL_OK")
</pallas_src>

<mosaic_0001>
module attributes {stable_mosaic.version = 11 : i64} {
  func.func @value_net_kernel(%arg0: i32, %arg1: memref<3x128xf32, #tpu.memory_space<vmem>>, %arg2: memref<64x3xf32, #tpu.memory_space<vmem>>, %arg3: memref<64x1xf32, #tpu.memory_space<vmem>>, %arg4: memref<32x64xf32, #tpu.memory_space<vmem>>, %arg5: memref<32x1xf32, #tpu.memory_space<vmem>>, %arg6: memref<32x1xf32, #tpu.memory_space<vmem>>, %arg7: memref<1x1xf32, #tpu.memory_space<vmem>>, %arg8: memref<1x128xf32, #tpu.memory_space<vmem>>) attributes {dimension_semantics = [#tpu.dimension_semantics<parallel>], iteration_bounds = array<i64: 1>, scalar_prefetch = 0 : i64, scratch_operands = 0 : i64, tpu.core_type = #tpu.core_type<tc>, window_params = [{transform_indices = @transform_0, window_bounds = array<i64: 3, 128>}, {pipeline_mode = #tpu.pipeline_mode<synchronous>, transform_indices = @transform_1, window_bounds = array<i64: 64, 3>}, {pipeline_mode = #tpu.pipeline_mode<synchronous>, transform_indices = @transform_2, window_bounds = array<i64: 64, 1>}, {pipeline_mode = #tpu.pipeline_mode<synchronous>, transform_indices = @transform_3, window_bounds = array<i64: 32, 64>}, {pipeline_mode = #tpu.pipeline_mode<synchronous>, transform_indices = @transform_4, window_bounds = array<i64: 32, 1>}, {pipeline_mode = #tpu.pipeline_mode<synchronous>, transform_indices = @transform_5, window_bounds = array<i64: 32, 1>}, {pipeline_mode = #tpu.pipeline_mode<synchronous>, transform_indices = @transform_6, window_bounds = array<i64: 1, 1>}, {transform_indices = @transform_7, window_bounds = array<i64: 1, 128>}]} {
    %c0 = arith.constant 0 : index
    %c0_0 = arith.constant 0 : index
    %0 = vector.load %arg1[%c0, %c0_0] : memref<3x128xf32, #tpu.memory_space<vmem>>, vector<3x128xf32>
    %c0_1 = arith.constant 0 : index
    %c0_2 = arith.constant 0 : index
    %1 = vector.load %arg2[%c0_1, %c0_2] : memref<64x3xf32, #tpu.memory_space<vmem>>, vector<64x3xf32>
    %c0_3 = arith.constant 0 : index
    %c0_4 = arith.constant 0 : index
    %2 = vector.load %arg3[%c0_3, %c0_4] : memref<64x1xf32, #tpu.memory_space<vmem>>, vector<64x1xf32>
    %3 = vector.extract_strided_slice %1 {offsets = [0, 0], sizes = [64, 1], strides = [1, 1]} : vector<64x3xf32> to vector<64x1xf32>
    %4 = vector.extract_strided_slice %0 {offsets = [0, 0], sizes = [1, 128], strides = [1, 1]} : vector<3x128xf32> to vector<1x128xf32>
    %5 = vector.broadcast %3 : vector<64x1xf32> to vector<64x128xf32>
    %6 = vector.broadcast %4 : vector<1x128xf32> to vector<64x128xf32>
    %7 = arith.mulf %5, %6 : vector<64x128xf32>
    %8 = vector.broadcast %2 : vector<64x1xf32> to vector<64x128xf32>
    %9 = arith.addf %8, %7 : vector<64x128xf32>
    %10 = vector.extract_strided_slice %1 {offsets = [0, 1], sizes = [64, 1], strides = [1, 1]} : vector<64x3xf32> to vector<64x1xf32>
    %11 = vector.extract_strided_slice %0 {offsets = [1, 0], sizes = [1, 128], strides = [1, 1]} : vector<3x128xf32> to vector<1x128xf32>
    %12 = vector.broadcast %10 : vector<64x1xf32> to vector<64x128xf32>
    %13 = vector.broadcast %11 : vector<1x128xf32> to vector<64x128xf32>
    %14 = arith.mulf %12, %13 : vector<64x128xf32>
    %15 = arith.addf %9, %14 : vector<64x128xf32>
    %16 = vector.extract_strided_slice %1 {offsets = [0, 2], sizes = [64, 1], strides = [1, 1]} : vector<64x3xf32> to vector<64x1xf32>
    %17 = vector.extract_strided_slice %0 {offsets = [2, 0], sizes = [1, 128], strides = [1, 1]} : vector<3x128xf32> to vector<1x128xf32>
    %18 = vector.broadcast %16 : vector<64x1xf32> to vector<64x128xf32>
    %19 = vector.broadcast %17 : vector<1x128xf32> to vector<64x128xf32>
    %20 = arith.mulf %18, %19 : vector<64x128xf32>
    %21 = arith.addf %15, %20 : vector<64x128xf32>
    %cst = arith.constant 0.000000e+00 : f32
    %22 = vector.broadcast %cst : f32 to vector<64x128xf32>
    %23 = arith.maximumf %21, %22 : vector<64x128xf32>
    %c0_5 = arith.constant 0 : index
    %c0_6 = arith.constant 0 : index
    %24 = vector.load %arg4[%c0_5, %c0_6] : memref<32x64xf32, #tpu.memory_space<vmem>>, vector<32x64xf32>
    %cst_7 = arith.constant dense<0.000000e+00> : vector<32x128xf32>
    %25 = tpu.matmul %24, %23, %cst_7 {dimension_numbers = #tpu.dot_dimension_numbers<[1], [0], [0], [1], [0, 0, 1, 1], [], []>} : vector<32x64xf32>, vector<64x128xf32>, vector<32x128xf32> -> vector<32x128xf32>
    %c0_8 = arith.constant 0 : index
    %c0_9 = arith.constant 0 : index
    %26 = vector.load %arg5[%c0_8, %c0_9] : memref<32x1xf32, #tpu.memory_space<vmem>>, vector<32x1xf32>
    %27 = vector.broadcast %26 : vector<32x1xf32> to vector<32x128xf32>
    %28 = arith.addf %25, %27 : vector<32x128xf32>
    %cst_10 = arith.constant 0.000000e+00 : f32
    %29 = vector.broadcast %cst_10 : f32 to vector<32x128xf32>
    %30 = arith.maximumf %28, %29 : vector<32x128xf32>
    %c0_11 = arith.constant 0 : index
    %c0_12 = arith.constant 0 : index
    %31 = vector.load %arg6[%c0_11, %c0_12] : memref<32x1xf32, #tpu.memory_space<vmem>>, vector<32x1xf32>
    %32 = vector.broadcast %31 : vector<32x1xf32> to vector<32x128xf32>
    %33 = arith.mulf %30, %32 : vector<32x128xf32>
    %cst_13 = arith.constant dense<0.000000e+00> : vector<128xf32>
    %34 = vector.multi_reduction <add>, %33, %cst_13 [0] : vector<32x128xf32> to vector<128xf32>
    %35 = vector.shape_cast %34 : vector<128xf32> to vector<1x128xf32>
    %c0_14 = arith.constant 0 : index
    %c0_15 = arith.constant 0 : index
    %36 = vector.load %arg7[%c0_14, %c0_15] : memref<1x1xf32, #tpu.memory_space<vmem>>, vector<1x1xf32>
    %37 = vector.broadcast %36 : vector<1x1xf32> to vector<1x128xf32>
    %38 = arith.addf %35, %37 : vector<1x128xf32>
    %c0_16 = arith.constant 0 : index
    %c0_17 = arith.constant 0 : index
    %39 = vector.load %arg8[%c0_16, %c0_17] : memref<1x128xf32, #tpu.memory_space<vmem>>, vector<1x128xf32>
    tpu.vector_store %arg8[%c0_16, %c0_17], %38 {strides = array<i32>} : memref<1x128xf32, #tpu.memory_space<vmem>>, vector<1x128xf32>,
    return
  }
  func.func @transform_0(%arg0: i32) -> (i32, i32) {
    %c0_i32 = arith.constant 0 : i32
    %c0_i32_0 = arith.constant 0 : i32
    return %c0_i32, %arg0 : i32, i32
  }
  func.func @transform_1(%arg0: i32) -> (i32, i32) {
    %c0_i32 = arith.constant 0 : i32
    %c0_i32_0 = arith.constant 0 : i32
    %c0_i32_1 = arith.constant 0 : i32
    return %c0_i32, %c0_i32_0 : i32, i32
  }
  func.func @transform_2(%arg0: i32) -> (i32, i32) {
    %c0_i32 = arith.constant 0 : i32
    %c0_i32_0 = arith.constant 0 : i32
    %c0_i32_1 = arith.constant 0 : i32
    return %c0_i32, %c0_i32_0 : i32, i32
  }
  func.func @transform_3(%arg0: i32) -> (i32, i32) {
    %c0_i32 = arith.constant 0 : i32
    %c0_i32_0 = arith.constant 0 : i32
    %c0_i32_1 = arith.constant 0 : i32
    return %c0_i32, %c0_i32_0 : i32, i32
  }
  func.func @transform_4(%arg0: i32) -> (i32, i32) {
    %c0_i32 = arith.constant 0 : i32
    %c0_i32_0 = arith.constant 0 : i32
    %c0_i32_1 = arith.constant 0 : i32
    return %c0_i32, %c0_i32_0 : i32, i32
  }
  func.func @transform_5(%arg0: i32) -> (i32, i32) {
    %c0_i32 = arith.constant 0 : i32
    %c0_i32_0 = arith.constant 0 : i32
    %c0_i32_1 = arith.constant 0 : i32
    return %c0_i32, %c0_i32_0 : i32, i32
  }
  func.func @transform_6(%arg0: i32) -> (i32, i32) {
    %c0_i32 = arith.constant 0 : i32
    %c0_i32_0 = arith.constant 0 : i32
    %c0_i32_1 = arith.constant 0 : i32
    return %c0_i32, %c0_i32_0 : i32, i32
  }
  func.func @transform_7(%arg0: i32) -> (i32, i32) {
    %c0_i32 = arith.constant 0 : i32
    %c0_i32_0 = arith.constant 0 : i32
    return %c0_i32, %arg0 : i32, i32
  }
}

</mosaic_0001>

<bundles_post_ra>
// kernel: tpu_custom_call.1
= control target key start
LH: loop header
LB: loop body
LE: loop exit
PB: predicated region body
PF: predicated region fallthrough
CT: control target
= control target key end

     0   :  { %s754_s0 = inlined_call_operand.vmem [shape: f32[3,128], index: 0, kind: input, shape index: {}]   ;;  %s755_s1 = inlined_call_operand.vmem [shape: f32[64,3], index: 1, kind: input, shape index: {}]   ;;  %s756_s2 = inlined_call_operand.vmem [shape: f32[64,1], index: 2, kind: input, shape index: {}]   ;;  %s757_s3 = inlined_call_operand.vmem [shape: f32[32,64], index: 3, kind: input, shape index: {}]   ;;  %s758_s4 = inlined_call_operand.vmem [shape: f32[32,1], index: 4, kind: input, shape index: {}]   ;;  %s759_s5 = inlined_call_operand.vmem [shape: f32[32,1], index: 5, kind: input, shape index: {}]   ;;  %s760_s6 = inlined_call_operand.<no memory space> [shape: f32[1,1], index: 6, kind: input, shape index: {}]   ;;  %s761_s7 = inlined_call_operand.hbm [shape: f32[1,128], index: 7, kind: output, shape index: {}]  }
   0x1   :  { %v12_v0 = vstv %s760_s6 }
   0x2   :  { %13 = vst [vmem:[#allocation2] sm:$0x1] %v12_v0 }
   0x3   :  { %v45_v1 = vld [vmem:[%s756_s2 + $0x38] sm:$0xff]  ;;  %v36_v2 = vld [vmem:[%s755_s1 + $0x30] sm:$0xff]  ;;  %v555_v3 = vmov 1   ;;  %v556_v4 = vmov 0   ;;  %v34_v5 = vld [vmem:[%s755_s1 + $0x20] sm:$0xff] }
   0x4   :  { %512 = vset.pattern.permute.xlu0 %v555_v3  ;;  %509 = vset.pattern.permute.xlu1 %v556_v4  ;;  %v37_v6 = vld [vmem:[%s755_s1 + $0x38] sm:$0xff] }
   0x5   :  { %135 = vperm.xlu1 %509, %v45_v1   ;;  %171 = vperm.xlu0 %512, %v36_v2  }
   0x6   :  { %14 = vsyncpa [#allocation4], 0  ;;  %v32_v7 = vld [vmem:[%s755_s1 + $0x10] sm:$0xff]  ;;  %v557_v9 = vmov 2   ;;  %v35_v10 = vld [vmem:[%s755_s1 + $0x28] sm:$0xff]  ;;  %vm286_vm0 = vcmask 523264   ;;  %v86_v32 = vlaneseq }
   0x7   :  { %v44_v8 = vld [vmem:[%s756_s2 + $0x30] sm:$0xff]  ;;  %v43_v11 = vld [vmem:[%s756_s2 + $0x28] sm:$0xff]  ;;  %v33_v12 = vld [vmem:[%s755_s1 + $0x18] sm:$0xff] }
   0x8   :  { %v41_v13 = vld [vmem:[%s756_s2 + $0x18] sm:$0xff]  ;;  %v42_v14 = vld [vmem:[%s756_s2 + $0x20] sm:$0xff]  ;;  %v31_v15 = vld [vmem:[%s755_s1 + $0x8] sm:$0xff]  ;;  %v698_v34 = vshrl.u32 %v86_v32, 7 }
   0x9   :  { %510 = vset.pattern.permute.xlu1 %v555_v3  ;;  %163 = vperm.xlu0 %512, %v34_v5   ;;  %v39_v16 = vld [vmem:[%s756_s2 + $0x8] sm:$0xff]  ;;  %v38_v17 = vld [vmem:[%s756_s2] sm:$0xff]  ;;  %v40_v18 = vld [vmem:[%s756_s2 + $0x10] sm:$0xff] }
   0xa   :  { %175 = vperm.xlu1 %510, %v37_v6   ;;  %v30_v19 = vld [vmem:[%s755_s1] sm:$0xff]  ;;  %v260_v21 = vld [vmem:[%s757_s3 + $0x10] sm:$0xff]  ;;  %v263_v23 = vld [vmem:[%s758_s4 + $0x8] sm:$0xff]  ;;  %v88_v37 = vsub.s32 0, %v698_v34  ;;  %v180_v38 = vsub.s32 1, %v698_v34  ;;  %v232_v43 = vsub.s32 2, %v698_v34 }
   0xb   :  { %v258_v20 = vld [vmem:[%s757_s3] sm:$0xff]  ;;  %486 = vmatprep.mubr.msk.f32.mxu1 %vm286_vm0, %v260_v21  ;;  %v264_v24 = vld [vmem:[%s758_s4 + $0x10] sm:$0xff]  ;;  %v265_v26 = vld [vmem:[%s758_s4 + $0x18] sm:$0xff] }
   0xc   :  { %483 = vmatprep.mubr.msk.f32.mxu0 %vm286_vm0, %v258_v20  ;;  %v262_v22 = vld [vmem:[%s758_s4] sm:$0xff]  ;;  %v390_v27 = vld [vmem:[%s759_s5 + $0x10] sm:$0xff]  ;;  %v389_v28 = vld [vmem:[%s759_s5 + $0x8] sm:$0xff] }
   0xd   :  { %155 = vperm.xlu0 %512, %v32_v7   ;;  %v388_v25 = vld [vmem:[%s759_s5] sm:$0xff]  ;;  %v391_v30 = vld [vmem:[%s759_s5 + $0x18] sm:$0xff] }
   0xe   :  { %511 = vset.pattern.permute.xlu1 %v556_v4  ;;  %v425_v29 = vld [vmem:[#allocation2] sm:$0x1] }
   0xf   :  { %130 = vperm.xlu1 %511, %v44_v8   ;;  %v29_v40 = vld [vmem:[%s754_s0] sm:$0x7] }
  0x10   :  { %v709_v42 = vrot.slane %v29_v40, %v88_v37  ;;  %v712_v44 = vrot.slane %v29_v40, %v180_v38  ;;  %v715_v47 = vrot.slane %v29_v40, %v232_v43 }
  0x11   :  { %523 = vset.pattern.permute.xlu0 %v556_v4 }
  0x12   :  { %83 = vperm.xlu0 %523, %v37_v6  }
  0x13   :  { %513 = vset.pattern.permute.xlu1 %v557_v9 }
  0x14   :  { %227 = vperm.xlu1 %513, %v37_v6  }
  0x16   :  { %78 = vperm.xlu0 %523, %v36_v2  }
  0x18   :  { %514 = vset.pattern.permute.xlu1 %v556_v4 }
  0x19   :  { %68 = vperm.xlu1 %514, %v34_v5  }
  0x1a   :  { %73 = vperm.xlu0 %523, %v35_v10  }
  0x1d   :  { %515 = vset.pattern.permute.xlu1 %v555_v3 }
  0x1e   :  { %167 = vperm.xlu1 %515, %v35_v10   ;;  %125 = vperm.xlu0 %523, %v43_v11  }
  0x22   :  { %516 = vset.pattern.permute.xlu1 %v557_v9  ;;  %63 = vperm.xlu0 %523, %v33_v12  }
  0x23   :  { %223 = vperm.xlu1 %516, %v36_v2  }
  0x26   :  { %115 = vperm.xlu0 %523, %v41_v13  }
  0x27   :  { %517 = vset.pattern.permute.xlu1 %v556_v4 }
  0x28   :  { %120 = vperm.xlu1 %517, %v42_v14  }
  0x2a   :  { %53 = vperm.xlu0 %523, %v31_v15  }
  0x2c   :  { %518 = vset.pattern.permute.xlu1 %v557_v9 }
  0x2d   :  { %219 = vperm.xlu1 %518, %v35_v10  }
  0x2e   :  { %105 = vperm.xlu0 %523, %v39_v16  }
  0x31   :  { %519 = vset.pattern.permute.xlu1 %v556_v4 }
  0x32   :  { %58 = vperm.xlu1 %519, %v32_v7   ;;  %100 = vperm.xlu0 %523, %v38_v17  }
  0x36   :  { %520 = vset.pattern.permute.xlu1 %v555_v3  ;;  %529 = vset.pattern.permute.xlu0 %v557_v9 }
  0x37   :  { %159 = vperm.xlu1 %520, %v33_v12   ;;  %203 = vperm.xlu0 %529, %v31_v15  }
  0x3b   :  { %521 = vset.pattern.permute.xlu1 %v557_v9  ;;  %532 = vset.pattern.permute.xlu0 %v556_v4 }
  0x3c   :  { %215 = vperm.xlu1 %521, %v34_v5   ;;  %273 = vperm.xlu0 %532, %v263_v23  }
  0x40   :  { %522 = vset.pattern.permute.xlu1 %v556_v4  ;;  %394 = vperm.xlu0 %532, %v388_v25  }
  0x41   :  { %110 = vperm.xlu1 %522, %v40_v18  }
  0x44   :  { %404 = vperm.xlu0 %532, %v390_v27  }
  0x45   :  { %524 = vset.pattern.permute.xlu1 %v557_v9 }
  0x46   :  { %211 = vperm.xlu1 %524, %v33_v12  }
  0x48   :  { %428 = vperm.xlu0 %532, %v425_v29  }
  0x4a   :  { %525 = vset.pattern.permute.xlu1 %v556_v4 }
  0x4b   :  { %48 = vperm.xlu1 %525, %v30_v19  }
  0x4f   :  { %526 = vset.pattern.permute.xlu1 %v555_v3 }
  0x50   :  { %151 = vperm.xlu1 %526, %v31_v15  }
  0x54   :  { %527 = vset.pattern.permute.xlu1 %v557_v9 }
  0x55   :  { %207 = vperm.xlu1 %527, %v32_v7  }
  0x59   :  { %528 = vset.pattern.permute.xlu1 %v555_v3 }
  0x5a   :  { %147 = vperm.xlu1 %528, %v30_v19  }
  0x5e   :  { %530 = vset.pattern.permute.xlu1 %v557_v9 }
  0x5f   :  { %199 = vperm.xlu1 %530, %v30_v19  }
  0x63   :  { %531 = vset.pattern.permute.xlu1 %v556_v4 }
  0x64   :  { %268 = vperm.xlu1 %531, %v262_v22  }
  0x68   :  { %278 = vperm.xlu1 %531, %v264_v24  }
  0x6c   :  { %283 = vperm.xlu1 %531, %v265_v26  }
  0x70   :  { %399 = vperm.xlu1 %531, %v389_v28  }
  0x74   :  { %409 = vperm.xlu1 %531, %v391_v30  }
  0x80   :  { %v136_v31 = vpop.permute.xlu1 %135  ;;  %v172_v33 = vpop.permute.xlu0 %171 }
  0x81   :  { %v188_v59 = vmul.f32 %v712_v44, %v172_v33 }
  0x84   :  { %v164_v35 = vpop.permute.xlu0 %163 }
  0x85   :  { %v176_v36 = vpop.permute.xlu1 %175  ;;  %v186_v17 = vmul.f32 %v712_v44, %v164_v35 }
  0x86   :  { %v189_v49 = vmul.f32 %v712_v44, %v176_v36 }
  0x88   :  { %v702_v39 = vpop.permute.xlu0 %155 }
  0x89   :  { %v184_v29 = vmul.f32 %v712_v44, %v702_v39 }
  0x8a   :  { %v131_v41 = vpop.permute.xlu1 %130 }
  0x8d   :  { %v84_v45 = vpop.permute.xlu0 %83 }
  0x8e   :  { %v97_v46 = vmul.f32 %v709_v42, %v84_v45 }
  0x8f   :  { %v228_v48 = vpop.permute.xlu1 %227 }
  0x90   :  { %v145_v50 = vadd.f32 %v136_v31, %v97_v46  ;;  %v241_v52 = vmul.f32 %v715_v47, %v228_v48 }
  0x91   :  { %v79_v54 = vpop.permute.xlu0 %78 }
  0x92   :  { %v197_v51 = vadd.f32 %v189_v49, %v145_v50  ;;  %v96_v57 = vmul.f32 %v709_v42, %v79_v54 }
  0x94   :  { %v249_v53 = vadd.f32 %v241_v52, %v197_v51  ;;  %v69_v55 = vpop.permute.xlu1 %68  ;;  %v144_v60 = vadd.f32 %v131_v41, %v96_v57 }
  0x95   :  { %v74_v61 = vpop.permute.xlu0 %73  ;;  %v94_v15 = vmul.f32 %v709_v42, %v69_v55 }
  0x96   :  { %v257_v56 = vmax.f32 %v249_v53, 0.0  ;;  %v196_v63 = vadd.f32 %v188_v59, %v144_v60  ;;  %v95_v1 = vmul.f32 %v709_v42, %v74_v61 }
  0x98   :  { %467 = vmatprep.subr.mxu0 %v257_v56  ;;  %489 = vmatprep.subr.mxu1 %v257_v56 }
  0x99   :  { %v168_v58 = vpop.permute.xlu1 %167  ;;  %468 = vmatpush3.msra.mxu0 %v257_v56  ;;  %497 = vmatpush3.msra.mxu1 %v257_v56  ;;  %v126_v3 = vpop.permute.xlu0 %125 }
  0x9a   :  { %v187_v6 = vmul.f32 %v712_v44, %v168_v58  ;;  %v143_v7 = vadd.f32 %v126_v3, %v95_v1 }
  0x9c   :  { %v195_v9 = vadd.f32 %v187_v6, %v143_v7 }
  0x9d   :  { %v64_v14 = vpop.permute.xlu0 %63 }
  0x9e   :  { %v224_v62 = vpop.permute.xlu1 %223  ;;  %v93_v23 = vmul.f32 %v709_v42, %v64_v14 }
  0x9f   :  { %v240_v0 = vmul.f32 %v715_v47, %v224_v62 }
  0xa1   :  { %v248_v2 = vadd.f32 %v240_v0, %v196_v63  ;;  %v116_v19 = vpop.permute.xlu0 %115 }
  0xa2   :  { %v141_v31 = vadd.f32 %v116_v19, %v93_v23 }
  0xa3   :  { %v256_v4 = vmax.f32 %v248_v2, 0.0  ;;  %v121_v5 = vpop.permute.xlu1 %120 }
  0xa4   :  { %v142_v18 = vadd.f32 %v121_v5, %v94_v15 }
  0xa5   :  { %469 = vmatprep.subr.mxu0 %v256_v4  ;;  %490 = vmatprep.subr.mxu1 %v256_v4  ;;  %v54_v26 = vpop.permute.xlu0 %53 }
  0xa6   :  { %470 = vmatpush3.msra.mxu0 %v256_v4  ;;  %498 = vmatpush3.msra.mxu1 %v256_v4  ;;  %v194_v21 = vadd.f32 %v186_v17, %v142_v18  ;;  %v91_v39 = vmul.f32 %v709_v42, %v54_v26  ;;  %v259_v4 = vld [vmem:[%s757_s3 + $0x8] sm:$0xff] }
  0xa8   :  { %v220_v8 = vpop.permute.xlu1 %219 }
  0xa9   :  { %v239_v10 = vmul.f32 %v715_v47, %v220_v8  ;;  %v106_v36 = vpop.permute.xlu0 %105 }
  0xaa   :  { %v139_v51 = vadd.f32 %v106_v36, %v91_v39 }
  0xab   :  { %v247_v11 = vadd.f32 %v239_v10, %v195_v9 }
  0xad   :  { %v255_v12 = vmax.f32 %v247_v11, 0.0  ;;  %v59_v13 = vpop.permute.xlu1 %58  ;;  %v101_v46 = vpop.permute.xlu0 %100 }
  0xae   :  { %v92_v25 = vmul.f32 %v709_v42, %v59_v13 }
  0xaf   :  { %471 = vmatprep.subr.mxu0 %v255_v12  ;;  %491 = vmatprep.subr.mxu1 %v255_v12 }
  0xb0   :  { %472 = vmatpush3.msra.mxu0 %v255_v12  ;;  %499 = vmatpush3.msra.mxu1 %v255_v12 }
  0xb2   :  { %v160_v16 = vpop.permute.xlu1 %159  ;;  %v204_v50 = vpop.permute.xlu0 %203 }
  0xb3   :  { %v185_v32 = vmul.f32 %v712_v44, %v160_v16  ;;  %v235_v53 = vmul.f32 %v715_v47, %v204_v50 }
  0xb5   :  { %v193_v38 = vadd.f32 %v185_v32, %v141_v31 }
  0xb7   :  { %v216_v20 = vpop.permute.xlu1 %215  ;;  %v274_v6 = vpop.permute.xlu0 %273 }
  0xb8   :  { %v238_v22 = vmul.f32 %v715_v47, %v216_v20 }
  0xba   :  { %v246_v24 = vadd.f32 %v238_v22, %v194_v21 }
  0xbb   :  { %v395_v10 = vpop.permute.xlu0 %394 }
  0xbc   :  { %v254_v27 = vmax.f32 %v246_v24, 0.0  ;;  %v111_v28 = vpop.permute.xlu1 %110 }
  0xbd   :  { %v140_v30 = vadd.f32 %v111_v28, %v92_v25 }
  0xbe   :  { %473 = vmatprep.subr.mxu0 %v254_v27  ;;  %492 = vmatprep.subr.mxu1 %v254_v27 }
  0xbf   :  { %v192_v33 = vadd.f32 %v184_v29, %v140_v30  ;;  %474 = vmatpush3.msra.mxu0 %v254_v27  ;;  %500 = vmatpush3.msra.mxu1 %v254_v27  ;;  %v405_v24 = vpop.permute.xlu0 %404 }
  0xc1   :  { %v212_v35 = vpop.permute.xlu1 %211 }
  0xc2   :  { %v237_v40 = vmul.f32 %v715_v47, %v212_v35 }
  0xc3   :  { %v429_v36 = vpop.permute.xlu0 %428 }
  0xc4   :  { %v245_v41 = vadd.f32 %v237_v40, %v193_v38  ;;  %v434_v40 = vrot.slane %v429_v36, %v88_v37 }
  0xc6   :  { %v253_v43 = vmax.f32 %v245_v41, 0.0  ;;  %v49_v45 = vpop.permute.xlu1 %48 }
  0xc7   :  { %v90_v58 = vmul.f32 %v709_v42, %v49_v45 }
  0xc8   :  { %475 = vmatprep.subr.mxu0 %v253_v43  ;;  %493 = vmatprep.subr.mxu1 %v253_v43 }
  0xc9   :  { %476 = vmatpush3.msra.mxu0 %v253_v43  ;;  %501 = vmatpush3.msra.mxu1 %v253_v43  ;;  %v138_v63 = vadd.f32 %v101_v46, %v90_v58 }
  0xcb   :  { %v152_v48 = vpop.permute.xlu1 %151 }
  0xcc   :  { %v183_v49 = vmul.f32 %v712_v44, %v152_v48 }
  0xce   :  { %v191_v52 = vadd.f32 %v183_v49, %v139_v51 }
  0xd0   :  { %v208_v54 = vpop.permute.xlu1 %207  ;;  %v243_v56 = vadd.f32 %v235_v53, %v191_v52 }
  0xd1   :  { %v236_v55 = vmul.f32 %v715_v47, %v208_v54 }
  0xd2   :  { %v251_v61 = vmax.f32 %v243_v56, 0.0 }
  0xd3   :  { %v244_v57 = vadd.f32 %v236_v55, %v192_v33 }
  0xd5   :  { %v252_v59 = vmax.f32 %v244_v57, 0.0  ;;  %v148_v60 = vpop.permute.xlu1 %147 }
  0xd6   :  { %v182_v62 = vmul.f32 %v712_v44, %v148_v60  ;;  %v261_v44 = vld [vmem:[%s757_s3 + $0x18] sm:$0xff]  ;;  %s558_s3 = smov [#allocation3]  }
  0xd7   :  { %477 = vmatprep.subr.mxu0 %v252_v59  ;;  %494 = vmatprep.subr.mxu1 %v252_v59  ;;  %s443_s8 = sshll.u32 %s558_s3, 4  ;;  %s444_s8 = int_to_ptr.vmem [resolvable:$true] %s443_s8 }
  0xd8   :  { %478 = vmatpush3.msra.mxu0 %v252_v59  ;;  %502 = vmatpush3.msra.mxu1 %v252_v59  ;;  %v190_v1 = vadd.f32 %v182_v62, %v138_v63  ;;  %s533_s6 = scalar_lea.vmem %s444_s8, 16  ;;  %s537_s9 = scalar_lea.vmem %s444_s8, 32 }
  0xd9   :  { %479 = vmatprep.subr.mxu0 %v251_v61  ;;  %495 = vmatprep.subr.mxu1 %v251_v61  ;;  %p534_p0 = scmp.ne.s32.totalorder %s444_s8, %s533_s6  ;;  %p538_p1 = scmp.lt.s32.totalorder %s444_s8, %s444_s8 }
  0xda   :  { %v200_v0 = vpop.permute.xlu1 %199  ;;  %480 = vmatpush3.msra.mxu0 %v251_v61  ;;  %503 = vmatpush3.msra.mxu1 %v251_v61  ;;  %p539_p2 = scmp.lt.s32.totalorder %s537_s9, %s533_s6 }
  0xdb   :  { %v234_v2 = vmul.f32 %v715_v47, %v200_v0 }
  0xdc   :  { %p540_p3 = por %p539_p2, %p538_p1 }
  0xdd   :  { %v242_v3 = vadd.f32 %v234_v2, %v190_v1 }
  0xde   :  { %p541_p4 = pnand %p540_p3, %p534_p0 }
  0xdf   :  { %v250_v42 = vmax.f32 %v242_v3, 0.0  ;;  %v269_v5 = vpop.permute.xlu1 %268 }
  0xe1   :  { %481 = vmatprep.subr.mxu0 %v250_v42  ;;  %496 = vmatprep.subr.mxu1 %v250_v42 }
  0xe2   :  { %482 = vmatpush3.msra.mxu0 %v250_v42  ;;  %504 = vmatpush3.msra.mxu1 %v250_v42 }
  0xe3   :  { %484 = vmatmul.mubr.msk.f32.vlgmr.msra.gmra.mxu0 %vm286_vm0, %v259_v4  ;;  %487 = vmatmul.mubr.msk.f32.vlgmr.msra.gmra.mxu1 %vm286_vm0, %v261_v44  ;;  %v279_v47 = vpop.permute.xlu1 %278 }
  0xe7   :  { %v284_v7 = vpop.permute.xlu1 %283 }
  0xeb   :  { %v400_v18 = vpop.permute.xlu1 %399 }
  0xef   :  { %v410_v27 = vpop.permute.xlu1 %409 }
 0x1a3   :  { %v485_v8 = vpop.f32.mrf.mxu0  ;;  %v488_v9 = vpop.f32.mrf.mxu1 }
 0x1a4   :  { %v371_v11 = vadd.f32 %v485_v8, %v274_v6  ;;  %v381_v15 = vadd.f32 %v488_v9, %v284_v7 }
 0x1a5   :  { %v365_v12 = vpop.f32.mrf.mxu0  ;;  %v375_v13 = vpop.f32.mrf.mxu1 }
 0x1a6   :  { %v385_v14 = vmax.f32 %v371_v11, 0.0  ;;  %v366_v16 = vadd.f32 %v365_v12, %v269_v5  ;;  %v376_v17 = vadd.f32 %v375_v13, %v279_v47  ;;  %v387_v22 = vmax.f32 %v381_v15, 0.0 }
 0x1a8   :  { %v384_v19 = vmax.f32 %v366_v16, 0.0  ;;  %v386_v20 = vmax.f32 %v376_v17, 0.0  ;;  %v413_v21 = vmul.f32 %v400_v18, %v385_v14  ;;  %v415_v28 = vmul.f32 %v410_v27, %v387_v22 }
 0x1aa   :  { %v412_v23 = vmul.f32 %v395_v10, %v384_v19  ;;  %v414_v26 = vmul.f32 %v405_v24, %v386_v20 }
 0x1ac   :  { %v416_v25 = vadd.f32 %v413_v21, %v412_v23 }
 0x1ae   :  { %v417_v29 = vadd.f32 %v416_v25, %v414_v26 }
 0x1b0   :  { %v418_v30 = vadd.f32 %v417_v29, %v415_v28 }
 0x1b2   :  { %v419_v31 = vrot.slane %v418_v30, 4 }
 0x1b4   :  { %v420_v32 = vadd.f32 %v419_v31, %v418_v30 }
 0x1b6   :  { %v421_v33 = vrot.slane %v420_v32, 2 }
 0x1b8   :  { %v422_v35 = vadd.f32 %v421_v33, %v420_v32 }
 0x1ba   :  { %v423_v38 = vrot.slane %v422_v35, 1 }
 0x1bc   :  { %v424_v41 = vadd.f32 %v423_v38, %v422_v35 }
 0x1be   :  { %v435_v43 = vadd.f32 %v434_v40, %v424_v41 }
 0x1c0   :  { %436 = vst [vmem:[#allocation3] sm:$0x1] %v435_v43 }
 0x1c1   :  { %544 = shalt.err (!%p541_p4)
}
 0x1c2   :  { %446 = dma.vmem_to_hbm [thread:$0]  %s444_s8, 16, %s761_s7, [#allocation4]  }
 0x1c3   :  { %553 = dma.done.wait [#allocation4], 16  }
 0x1c4   :  { %554 = vsyncadd [#allocation4], 4294967280 }
 0x1c5   :  { %450 = vsyncpa [#allocation4], 1 }

</bundles_post_ra>
